<compile_context>
chip_gen: v5e
topology: v5e:2x2
jax: 0.10.0
libtpu: 0.0.40
codegen_flags: <defaults>
</compile_context>

<pallas_src>
import functools

import jax
import jax.numpy as jnp
from jax.experimental import pallas as pl
from jax.experimental.pallas import tpu as pltpu


def _spectral_mul_kernel(xr_ref, xi_ref, wr_ref, wi_ref, or_ref, oi_ref):
    # xr_ref/xi_ref: (B, Cin, TM)   f32  real / imag of the x modes block
    # wr_ref/wi_ref: (Cin, Cout, TM) bf16 (or f32) real / imag weights block
    # or_ref/oi_ref: (B, Cout, TM)  f32  real / imag of the output block
    b, cin, tm = xr_ref.shape
    cout = wr_ref.shape[1]

    acc_r = jnp.zeros((b, cout, tm), jnp.float32)
    acc_i = jnp.zeros((b, cout, tm), jnp.float32)

    # Cin accumulation loop (fully unrolled: Cin is small and static, so the
    # static slices below are free views — equivalent to fori_loop(unroll=True)).
    # Live temporaries are two (B, Cout, TM) accumulators + one Cin slice,
    # instead of materialized (Cin, B, Cout, TM) broadcast products.
    for i in range(cin):
        xr = xr_ref[:, i, :][:, None, :]                    # (B, 1, TM)
        xi = xi_ref[:, i, :][:, None, :]
        wr = wr_ref[i].astype(jnp.float32)[None, :, :]      # (1, Cout, TM)
        wi = wi_ref[i].astype(jnp.float32)[None, :, :]
        acc_r = acc_r + (xr * wr - xi * wi)
        acc_i = acc_i + (xr * wi + xi * wr)

    # Straight dense stores (no in-kernel sublane repack).
    or_ref[...] = acc_r
    oi_ref[...] = acc_i


def _spectral_mul(xr, xi, wr, wi):
    # xr/xi: (B, Cin, Mp) f32 ; wr/wi: (Cin, Cout, Mp) bf16/f32 ; Mp % 128 == 0
    B, Cin, Mp = xr.shape
    Cout = wr.shape[1]
    wbytes = wr.dtype.itemsize

    # VMEM-aware tile choice: double-buffered (x + w + out) blocks capped at a
    # conservative budget that fits v5e's 16 MiB default scope and v7x's 64 MiB
    # physical VMEM with headroom.
    bytes_per_m = (2 * 4 * B * Cin          # xr + xi block bytes per mode
                   + 2 * wbytes * Cin * Cout  # wr + wi
                   + 2 * 4 * B * Cout)        # or + oi
    budget = 12 << 20
    tm = 128
    for cand in (2048, 1024, 512, 256, 128):
        if Mp % cand == 0 and 2 * cand * bytes_per_m <= budget:
            tm = cand
            break
    vmem_limit = int(min(max(3 * tm * bytes_per_m + (4 << 20), 16 << 20), 48 << 20))

    x_spec = pl.BlockSpec((B, Cin, tm), lambda t: (0, 0, t))
    w_spec = pl.BlockSpec((Cin, Cout, tm), lambda t: (0, 0, t))
    o_spec = pl.BlockSpec((B, Cout, tm), lambda t: (0, 0, t))

    cost = pl.CostEstimate(
        flops=8 * B * Cin * Cout * Mp,       # 4 mul + 4 add per complex MAC
        transcendentals=0,
        bytes_accessed=(2 * B * Cin * Mp * 4
                        + 2 * Cin * Cout * Mp * wbytes
                        + 2 * B * Cout * Mp * 4),
    )

    return pl.pallas_call(
        _spectral_mul_kernel,
        out_shape=(jax.ShapeDtypeStruct((B, Cout, Mp), jnp.float32),
                   jax.ShapeDtypeStruct((B, Cout, Mp), jnp.float32)),
        grid=(Mp // tm,),
        in_specs=[x_spec, x_spec, w_spec, w_spec],
        out_specs=(o_spec, o_spec),
        compiler_params=pltpu.CompilerParams(
            dimension_semantics=("parallel",),
            vmem_limit_bytes=vmem_limit),
        cost_estimate=cost,
    )(xr, xi, wr, wi)


def pack_weights(w1, w2, weight_dtype=jnp.bfloat16):
    """Hoisted weight preprocessing (call once, outside the forward pass).

    w1, w2: (Cin, Cout, m1, m2) complex64.
    Returns (wr, wi), each (Cin, Cout, Mp) in `weight_dtype`, where the last
    axis is [w1 modes (row-major), w2 modes, zero lane padding to mult. of 128].
    """
    cin, cout, m1, m2 = w1.shape
    m = m1 * m2
    wm = jnp.concatenate(
        [w1.reshape(cin, cout, m), w2.reshape(cin, cout, m)], axis=-1)  # (Cin,Cout,2M)
    m_tot = 2 * m
    mp = max(128, ((m_tot + 127) // 128) * 128)
    pad = ((0, 0), (0, 0), (0, mp - m_tot))
    wr = jnp.pad(jnp.real(wm).astype(jnp.float32), pad).astype(weight_dtype)
    wi = jnp.pad(jnp.imag(wm).astype(jnp.float32), pad).astype(weight_dtype)
    return wr, wi


def spectral_conv2d(x, wr, wi, modes1, modes2):
    """Forward pass of SpectralConv2d.

    x:      (B, Cin, H, W) float32
    wr, wi: (Cin, Cout, Mp) packed weights from pack_weights (static).
    """
    B, Cin, H, W = x.shape
    Cout = wr.shape[1]
    m1, m2 = modes1, modes2
    Wr_ = W // 2 + 1
    assert m2 <= Wr_, "modes2 must be <= W//2 + 1"
    assert 2 * m1 <= H, "need 2*modes1 <= H (corner blocks must not overlap)"
    M2 = 2 * m1 * m2
    Mp = wr.shape[-1]
    assert Mp >= M2 and Mp % 128 == 0

    # TODO(synk): rfft2/irfft2 have no Pallas primitive; plain jnp.fft (XLA) ops.
    x_ft = jnp.fft.rfft2(x)                                   # (B, Cin, H, Wr) c64

    # Fold both corners onto one flattened, lane-padded mode axis.
    xm = jnp.concatenate(
        [x_ft[:, :, :m1, :m2], x_ft[:, :, -m1:, :m2]], axis=2
    ).reshape(B, Cin, M2)
    pad = ((0, 0), (0, 0), (0, Mp - M2))
    xr = jnp.pad(jnp.real(xm).astype(jnp.float32), pad)
    xi = jnp.pad(jnp.imag(xm).astype(jnp.float32), pad)

    o_r, o_i = _spectral_mul(xr, xi, wr, wi)                  # each (B, Cout, Mp)

    # Assemble out_ft with pad + concat (no zeros + scatter passes).
    o = (o_r[..., :M2] + 1j * o_i[..., :M2]).astype(jnp.complex64)
    o = o.reshape(B, Cout, 2 * m1, m2)
    o = jnp.pad(o, ((0, 0), (0, 0), (0, 0), (0, Wr_ - m2)))   # zero cols m2..Wr
    mid = jnp.zeros((B, Cout, H - 2 * m1, Wr_), jnp.complex64)
    out_ft = jnp.concatenate([o[:, :, :m1], mid, o[:, :, m1:]], axis=2)
    return jnp.fft.irfft2(out_ft, s=(H, W))


def _reference_forward(x, w1, w2, m1, m2):
    """Pure-JAX reference mirroring the PyTorch forward exactly."""
    B, Cin, H, W = x.shape
    Cout = w1.shape[1]
    x_ft = jnp.fft.rfft2(x)

    def mul(a, w):   # einsum('bixy,ioxy->boxy')
        return jnp.sum(a[:, :, None, :, :] * w[None, :, :, :, :], axis=1)

    out_ft = jnp.zeros((B, Cout, H, W // 2 + 1), jnp.complex64)
    out_ft = out_ft.at[:, :, :m1, :m2].set(mul(x_ft[:, :, :m1, :m2], w1))
    out_ft = out_ft.at[:, :, -m1:, :m2].set(mul(x_ft[:, :, -m1:, :m2], w2))
    return jnp.fft.irfft2(out_ft, s=(H, W))


if __name__ == "__main__":
    # Small, PyTorch-consistent shapes.
    B, Cin, Cout = 2, 4, 4
    H = W = 16
    m1, m2 = 4, 4                 # modes2 <= W//2 + 1

    key = jax.random.PRNGKey(0)
    kx, kw = jax.random.split(key)
    x = jax.random.normal(kx, (B, Cin, H, W), dtype=jnp.float32)

    # Weight init matching torch.rand(..., dtype=cfloat) * scale.
    scale = 1.0 / (Cin * Cout)
    wkeys = jax.random.split(kw, 4)

    def make_w(kr, ki):
        wr_ = jax.random.uniform(kr, (Cin, Cout, m1, m2), dtype=jnp.float32)
        wi_ = jax.random.uniform(ki, (Cin, Cout, m1, m2), dtype=jnp.float32)
        return (scale * (wr_ + 1j * wi_)).astype(jnp.complex64)

    w1 = make_w(wkeys[0], wkeys[1])
    w2 = make_w(wkeys[2], wkeys[3])

    # Weight preprocessing hoisted out of the per-call forward path.
    # bf16 weight planes halve weight DMA traffic (review item 6).
    wdtype = jnp.bfloat16
    wr_p, wi_p = pack_weights(w1, w2, weight_dtype=wdtype)
    wr_p, wi_p = jax.block_until_ready((wr_p, wi_p))

    fwd = jax.jit(functools.partial(spectral_conv2d, modes1=m1, modes2=m2))
    y = jax.block_until_ready(fwd(x, wr_p, wi_p))
    assert y.shape == (B, Cout, H, W)

    # Check 1 (tight): against the reference evaluated with the same bf16-
    # quantized weights the kernel actually uses -> differences are only
    # accumulation order (~1e-6).
    def dequant(w):
        return (jnp.real(w).astype(wdtype).astype(jnp.float32)
                + 1j * jnp.imag(w).astype(wdtype).astype(jnp.float32)
                ).astype(jnp.complex64)

    y_ref_q = _reference_forward(x, dequant(w1), dequant(w2), m1, m2)
    assert jnp.allclose(y, y_ref_q, atol=1e-4, rtol=1e-4), "mismatch vs quantized-weight reference"

    # Check 2 (loose): against the full-precision module; only the bf16 weight
    # rounding (~2^-9 relative) separates them.
    y_ref = _reference_forward(x, w1, w2, m1, m2)
    assert jnp.allclose(y, y_ref, atol=1e-2, rtol=1e-2), "mismatch vs full-precision reference"

    print("KERNEL_OK")
</pallas_src>

<mosaic_0001>
module attributes {stable_mosaic.version = 11 : i64} {
  func.func @_spectral_mul_kernel(%arg0: i32, %arg1: memref<2x4x128xf32, #tpu.memory_space<vmem>>, %arg2: memref<2x4x128xf32, #tpu.memory_space<vmem>>, %arg3: memref<4x4x128xbf16, #tpu.memory_space<vmem>>, %arg4: memref<4x4x128xbf16, #tpu.memory_space<vmem>>, %arg5: memref<2x4x128xf32, #tpu.memory_space<vmem>>, %arg6: memref<2x4x128xf32, #tpu.memory_space<vmem>>) attributes {dimension_semantics = [#tpu.dimension_semantics<parallel>], iteration_bounds = array<i64: 1>, scalar_prefetch = 0 : i64, scratch_operands = 0 : i64, tpu.core_type = #tpu.core_type<tc>, window_params = [{transform_indices = @transform_0, window_bounds = array<i64: 2, 4, 128>}, {transform_indices = @transform_1, window_bounds = array<i64: 2, 4, 128>}, {transform_indices = @transform_2, window_bounds = array<i64: 4, 4, 128>}, {transform_indices = @transform_3, window_bounds = array<i64: 4, 4, 128>}, {transform_indices = @transform_4, window_bounds = array<i64: 2, 4, 128>}, {transform_indices = @transform_5, window_bounds = array<i64: 2, 4, 128>}]} {
    %cst = arith.constant 0.000000e+00 : f32
    %0 = vector.broadcast %cst : f32 to vector<2x4x128xf32>
    %cst_0 = arith.constant 0.000000e+00 : f32
    %1 = vector.broadcast %cst_0 : f32 to vector<2x4x128xf32>
    %c0 = arith.constant 0 : index
    %c0_1 = arith.constant 0 : index
    %c0_2 = arith.constant 0 : index
    %2 = vector.load %arg1[%c0, %c0_1, %c0_2] : memref<2x4x128xf32, #tpu.memory_space<vmem>>, vector<2x1x128xf32>
    %3 = vector.shape_cast %2 : vector<2x1x128xf32> to vector<2x128xf32>
    %4 = vector.shape_cast %3 : vector<2x128xf32> to vector<2x1x128xf32>
    %c0_3 = arith.constant 0 : index
    %c0_4 = arith.constant 0 : index
    %c0_5 = arith.constant 0 : index
    %5 = vector.load %arg2[%c0_3, %c0_4, %c0_5] : memref<2x4x128xf32, #tpu.memory_space<vmem>>, vector<2x1x128xf32>
    %6 = vector.shape_cast %5 : vector<2x1x128xf32> to vector<2x128xf32>
    %7 = vector.shape_cast %6 : vector<2x128xf32> to vector<2x1x128xf32>
    %c0_6 = arith.constant 0 : index
    %c0_7 = arith.constant 0 : index
    %c0_8 = arith.constant 0 : index
    %8 = vector.load %arg3[%c0_6, %c0_7, %c0_8] : memref<4x4x128xbf16, #tpu.memory_space<vmem>>, vector<1x4x128xbf16>
    %9 = vector.shape_cast %8 : vector<1x4x128xbf16> to vector<4x128xbf16>
    %10 = arith.extf %9 : vector<4x128xbf16> to vector<4x128xf32>
    %11 = vector.shape_cast %10 : vector<4x128xf32> to vector<1x4x128xf32>
    %c0_9 = arith.constant 0 : index
    %c0_10 = arith.constant 0 : index
    %c0_11 = arith.constant 0 : index
    %12 = vector.load %arg4[%c0_9, %c0_10, %c0_11] : memref<4x4x128xbf16, #tpu.memory_space<vmem>>, vector<1x4x128xbf16>
    %13 = vector.shape_cast %12 : vector<1x4x128xbf16> to vector<4x128xbf16>
    %14 = arith.extf %13 : vector<4x128xbf16> to vector<4x128xf32>
    %15 = vector.shape_cast %14 : vector<4x128xf32> to vector<1x4x128xf32>
    %16 = vector.broadcast %4 : vector<2x1x128xf32> to vector<2x4x128xf32>
    %17 = vector.broadcast %11 : vector<1x4x128xf32> to vector<2x4x128xf32>
    %18 = arith.mulf %16, %17 : vector<2x4x128xf32>
    %19 = vector.broadcast %7 : vector<2x1x128xf32> to vector<2x4x128xf32>
    %20 = vector.broadcast %15 : vector<1x4x128xf32> to vector<2x4x128xf32>
    %21 = arith.mulf %19, %20 : vector<2x4x128xf32>
    %22 = arith.subf %18, %21 : vector<2x4x128xf32>
    %23 = arith.addf %0, %22 : vector<2x4x128xf32>
    %24 = vector.broadcast %4 : vector<2x1x128xf32> to vector<2x4x128xf32>
    %25 = vector.broadcast %15 : vector<1x4x128xf32> to vector<2x4x128xf32>
    %26 = arith.mulf %24, %25 : vector<2x4x128xf32>
    %27 = vector.broadcast %7 : vector<2x1x128xf32> to vector<2x4x128xf32>
    %28 = vector.broadcast %11 : vector<1x4x128xf32> to vector<2x4x128xf32>
    %29 = arith.mulf %27, %28 : vector<2x4x128xf32>
    %30 = arith.addf %26, %29 : vector<2x4x128xf32>
    %31 = arith.addf %1, %30 : vector<2x4x128xf32>
    %c0_12 = arith.constant 0 : index
    %c1 = arith.constant 1 : index
    %c0_13 = arith.constant 0 : index
    %32 = vector.load %arg1[%c0_12, %c1, %c0_13] : memref<2x4x128xf32, #tpu.memory_space<vmem>>, vector<2x1x128xf32>
    %33 = vector.shape_cast %32 : vector<2x1x128xf32> to vector<2x128xf32>
    %34 = vector.shape_cast %33 : vector<2x128xf32> to vector<2x1x128xf32>
    %c0_14 = arith.constant 0 : index
    %c1_15 = arith.constant 1 : index
    %c0_16 = arith.constant 0 : index
    %35 = vector.load %arg2[%c0_14, %c1_15, %c0_16] : memref<2x4x128xf32, #tpu.memory_space<vmem>>, vector<2x1x128xf32>
    %36 = vector.shape_cast %35 : vector<2x1x128xf32> to vector<2x128xf32>
    %37 = vector.shape_cast %36 : vector<2x128xf32> to vector<2x1x128xf32>
    %c1_17 = arith.constant 1 : index
    %c0_18 = arith.constant 0 : index
    %c0_19 = arith.constant 0 : index
    %38 = vector.load %arg3[%c1_17, %c0_18, %c0_19] : memref<4x4x128xbf16, #tpu.memory_space<vmem>>, vector<1x4x128xbf16>
    %39 = vector.shape_cast %38 : vector<1x4x128xbf16> to vector<4x128xbf16>
    %40 = arith.extf %39 : vector<4x128xbf16> to vector<4x128xf32>
    %41 = vector.shape_cast %40 : vector<4x128xf32> to vector<1x4x128xf32>
    %c1_20 = arith.constant 1 : index
    %c0_21 = arith.constant 0 : index
    %c0_22 = arith.constant 0 : index
    %42 = vector.load %arg4[%c1_20, %c0_21, %c0_22] : memref<4x4x128xbf16, #tpu.memory_space<vmem>>, vector<1x4x128xbf16>
    %43 = vector.shape_cast %42 : vector<1x4x128xbf16> to vector<4x128xbf16>
    %44 = arith.extf %43 : vector<4x128xbf16> to vector<4x128xf32>
    %45 = vector.shape_cast %44 : vector<4x128xf32> to vector<1x4x128xf32>
    %46 = vector.broadcast %34 : vector<2x1x128xf32> to vector<2x4x128xf32>
    %47 = vector.broadcast %41 : vector<1x4x128xf32> to vector<2x4x128xf32>
    %48 = arith.mulf %46, %47 : vector<2x4x128xf32>
    %49 = vector.broadcast %37 : vector<2x1x128xf32> to vector<2x4x128xf32>
    %50 = vector.broadcast %45 : vector<1x4x128xf32> to vector<2x4x128xf32>
    %51 = arith.mulf %49, %50 : vector<2x4x128xf32>
    %52 = arith.subf %48, %51 : vector<2x4x128xf32>
    %53 = arith.addf %23, %52 : vector<2x4x128xf32>
    %54 = vector.broadcast %34 : vector<2x1x128xf32> to vector<2x4x128xf32>
    %55 = vector.broadcast %45 : vector<1x4x128xf32> to vector<2x4x128xf32>
    %56 = arith.mulf %54, %55 : vector<2x4x128xf32>
    %57 = vector.broadcast %37 : vector<2x1x128xf32> to vector<2x4x128xf32>
    %58 = vector.broadcast %41 : vector<1x4x128xf32> to vector<2x4x128xf32>
    %59 = arith.mulf %57, %58 : vector<2x4x128xf32>
    %60 = arith.addf %56, %59 : vector<2x4x128xf32>
    %61 = arith.addf %31, %60 : vector<2x4x128xf32>
    %c0_23 = arith.constant 0 : index
    %c2 = arith.constant 2 : index
    %c0_24 = arith.constant 0 : index
    %62 = vector.load %arg1[%c0_23, %c2, %c0_24] : memref<2x4x128xf32, #tpu.memory_space<vmem>>, vector<2x1x128xf32>
    %63 = vector.shape_cast %62 : vector<2x1x128xf32> to vector<2x128xf32>
    %64 = vector.shape_cast %63 : vector<2x128xf32> to vector<2x1x128xf32>
    %c0_25 = arith.constant 0 : index
    %c2_26 = arith.constant 2 : index
    %c0_27 = arith.constant 0 : index
    %65 = vector.load %arg2[%c0_25, %c2_26, %c0_27] : memref<2x4x128xf32, #tpu.memory_space<vmem>>, vector<2x1x128xf32>
    %66 = vector.shape_cast %65 : vector<2x1x128xf32> to vector<2x128xf32>
    %67 = vector.shape_cast %66 : vector<2x128xf32> to vector<2x1x128xf32>
    %c2_28 = arith.constant 2 : index
    %c0_29 = arith.constant 0 : index
    %c0_30 = arith.constant 0 : index
    %68 = vector.load %arg3[%c2_28, %c0_29, %c0_30] : memref<4x4x128xbf16, #tpu.memory_space<vmem>>, vector<1x4x128xbf16>
    %69 = vector.shape_cast %68 : vector<1x4x128xbf16> to vector<4x128xbf16>
    %70 = arith.extf %69 : vector<4x128xbf16> to vector<4x128xf32>
    %71 = vector.shape_cast %70 : vector<4x128xf32> to vector<1x4x128xf32>
    %c2_31 = arith.constant 2 : index
    %c0_32 = arith.constant 0 : index
    %c0_33 = arith.constant 0 : index
    %72 = vector.load %arg4[%c2_31, %c0_32, %c0_33] : memref<4x4x128xbf16, #tpu.memory_space<vmem>>, vector<1x4x128xbf16>
    %73 = vector.shape_cast %72 : vector<1x4x128xbf16> to vector<4x128xbf16>
    %74 = arith.extf %73 : vector<4x128xbf16> to vector<4x128xf32>
    %75 = vector.shape_cast %74 : vector<4x128xf32> to vector<1x4x128xf32>
    %76 = vector.broadcast %64 : vector<2x1x128xf32> to vector<2x4x128xf32>
    %77 = vector.broadcast %71 : vector<1x4x128xf32> to vector<2x4x128xf32>
    %78 = arith.mulf %76, %77 : vector<2x4x128xf32>
    %79 = vector.broadcast %67 : vector<2x1x128xf32> to vector<2x4x128xf32>
    %80 = vector.broadcast %75 : vector<1x4x128xf32> to vector<2x4x128xf32>
    %81 = arith.mulf %79, %80 : vector<2x4x128xf32>
    %82 = arith.subf %78, %81 : vector<2x4x128xf32>
    %83 = arith.addf %53, %82 : vector<2x4x128xf32>
    %84 = vector.broadcast %64 : vector<2x1x128xf32> to vector<2x4x128xf32>
    %85 = vector.broadcast %75 : vector<1x4x128xf32> to vector<2x4x128xf32>
    %86 = arith.mulf %84, %85 : vector<2x4x128xf32>
    %87 = vector.broadcast %67 : vector<2x1x128xf32> to vector<2x4x128xf32>
    %88 = vector.broadcast %71 : vector<1x4x128xf32> to vector<2x4x128xf32>
    %89 = arith.mulf %87, %88 : vector<2x4x128xf32>
    %90 = arith.addf %86, %89 : vector<2x4x128xf32>
    %91 = arith.addf %61, %90 : vector<2x4x128xf32>
    %c0_34 = arith.constant 0 : index
    %c3 = arith.constant 3 : index
    %c0_35 = arith.constant 0 : index
    %92 = vector.load %arg1[%c0_34, %c3, %c0_35] : memref<2x4x128xf32, #tpu.memory_space<vmem>>, vector<2x1x128xf32>
    %93 = vector.shape_cast %92 : vector<2x1x128xf32> to vector<2x128xf32>
    %94 = vector.shape_cast %93 : vector<2x128xf32> to vector<2x1x128xf32>
    %c0_36 = arith.constant 0 : index
    %c3_37 = arith.constant 3 : index
    %c0_38 = arith.constant 0 : index
    %95 = vector.load %arg2[%c0_36, %c3_37, %c0_38] : memref<2x4x128xf32, #tpu.memory_space<vmem>>, vector<2x1x128xf32>
    %96 = vector.shape_cast %95 : vector<2x1x128xf32> to vector<2x128xf32>
    %97 = vector.shape_cast %96 : vector<2x128xf32> to vector<2x1x128xf32>
    %c3_39 = arith.constant 3 : index
    %c0_40 = arith.constant 0 : index
    %c0_41 = arith.constant 0 : index
    %98 = vector.load %arg3[%c3_39, %c0_40, %c0_41] : memref<4x4x128xbf16, #tpu.memory_space<vmem>>, vector<1x4x128xbf16>
    %99 = vector.shape_cast %98 : vector<1x4x128xbf16> to vector<4x128xbf16>
    %100 = arith.extf %99 : vector<4x128xbf16> to vector<4x128xf32>
    %101 = vector.shape_cast %100 : vector<4x128xf32> to vector<1x4x128xf32>
    %c3_42 = arith.constant 3 : index
    %c0_43 = arith.constant 0 : index
    %c0_44 = arith.constant 0 : index
    %102 = vector.load %arg4[%c3_42, %c0_43, %c0_44] : memref<4x4x128xbf16, #tpu.memory_space<vmem>>, vector<1x4x128xbf16>
    %103 = vector.shape_cast %102 : vector<1x4x128xbf16> to vector<4x128xbf16>
    %104 = arith.extf %103 : vector<4x128xbf16> to vector<4x128xf32>
    %105 = vector.shape_cast %104 : vector<4x128xf32> to vector<1x4x128xf32>
    %106 = vector.broadcast %94 : vector<2x1x128xf32> to vector<2x4x128xf32>
    %107 = vector.broadcast %101 : vector<1x4x128xf32> to vector<2x4x128xf32>
    %108 = arith.mulf %106, %107 : vector<2x4x128xf32>
    %109 = vector.broadcast %97 : vector<2x1x128xf32> to vector<2x4x128xf32>
    %110 = vector.broadcast %105 : vector<1x4x128xf32> to vector<2x4x128xf32>
    %111 = arith.mulf %109, %110 : vector<2x4x128xf32>
    %112 = arith.subf %108, %111 : vector<2x4x128xf32>
    %113 = arith.addf %83, %112 : vector<2x4x128xf32>
    %114 = vector.broadcast %94 : vector<2x1x128xf32> to vector<2x4x128xf32>
    %115 = vector.broadcast %105 : vector<1x4x128xf32> to vector<2x4x128xf32>
    %116 = arith.mulf %114, %115 : vector<2x4x128xf32>
    %117 = vector.broadcast %97 : vector<2x1x128xf32> to vector<2x4x128xf32>
    %118 = vector.broadcast %101 : vector<1x4x128xf32> to vector<2x4x128xf32>
    %119 = arith.mulf %117, %118 : vector<2x4x128xf32>
    %120 = arith.addf %116, %119 : vector<2x4x128xf32>
    %121 = arith.addf %91, %120 : vector<2x4x128xf32>
    %c0_45 = arith.constant 0 : index
    %c0_46 = arith.constant 0 : index
    %c0_47 = arith.constant 0 : index
    %122 = vector.load %arg5[%c0_45, %c0_46, %c0_47] : memref<2x4x128xf32, #tpu.memory_space<vmem>>, vector<2x4x128xf32>
    tpu.vector_store %arg5[%c0_45, %c0_46, %c0_47], %113 {strides = array<i32>} : memref<2x4x128xf32, #tpu.memory_space<vmem>>, vector<2x4x128xf32>,
    %c0_48 = arith.constant 0 : index
    %c0_49 = arith.constant 0 : index
    %c0_50 = arith.constant 0 : index
    %123 = vector.load %arg6[%c0_48, %c0_49, %c0_50] : memref<2x4x128xf32, #tpu.memory_space<vmem>>, vector<2x4x128xf32>
    tpu.vector_store %arg6[%c0_48, %c0_49, %c0_50], %121 {strides = array<i32>} : memref<2x4x128xf32, #tpu.memory_space<vmem>>, vector<2x4x128xf32>,
    return
  }
  func.func @transform_0(%arg0: i32) -> (i32, i32, i32) {
    %c0_i32 = arith.constant 0 : i32
    %c0_i32_0 = arith.constant 0 : i32
    %c0_i32_1 = arith.constant 0 : i32
    return %c0_i32, %c0_i32_0, %arg0 : i32, i32, i32
  }
  func.func @transform_1(%arg0: i32) -> (i32, i32, i32) {
    %c0_i32 = arith.constant 0 : i32
    %c0_i32_0 = arith.constant 0 : i32
    %c0_i32_1 = arith.constant 0 : i32
    return %c0_i32, %c0_i32_0, %arg0 : i32, i32, i32
  }
  func.func @transform_2(%arg0: i32) -> (i32, i32, i32) {
    %c0_i32 = arith.constant 0 : i32
    %c0_i32_0 = arith.constant 0 : i32
    %c0_i32_1 = arith.constant 0 : i32
    return %c0_i32, %c0_i32_0, %arg0 : i32, i32, i32
  }
  func.func @transform_3(%arg0: i32) -> (i32, i32, i32) {
    %c0_i32 = arith.constant 0 : i32
    %c0_i32_0 = arith.constant 0 : i32
    %c0_i32_1 = arith.constant 0 : i32
    return %c0_i32, %c0_i32_0, %arg0 : i32, i32, i32
  }
  func.func @transform_4(%arg0: i32) -> (i32, i32, i32) {
    %c0_i32 = arith.constant 0 : i32
    %c0_i32_0 = arith.constant 0 : i32
    %c0_i32_1 = arith.constant 0 : i32
    return %c0_i32, %c0_i32_0, %arg0 : i32, i32, i32
  }
  func.func @transform_5(%arg0: i32) -> (i32, i32, i32) {
    %c0_i32 = arith.constant 0 : i32
    %c0_i32_0 = arith.constant 0 : i32
    %c0_i32_1 = arith.constant 0 : i32
    return %c0_i32, %c0_i32_0, %arg0 : i32, i32, i32
  }
}

</mosaic_0001>

<bundles_post_ra>
// kernel: reverse.1
= control target key start
LH: loop header
LB: loop body
LE: loop exit
PB: predicated region body
PF: predicated region fallthrough
CT: control target
= control target key end

     0   :  { %v72_v3 = vlaneseq  ;;  %v65_v6 = vld [vmem:[#allocation0 + $0x7] ss:$-1 sm:$0xff]  ;;  %v79_v8 = vld [vmem:[#allocation0 + $0x17] ss:$-1 sm:$0xff]  ;;  %s331_s0 = inlined_call_operand.vmem [shape: f32[2,4,16,7], index: 0, kind: input, shape index: {}]   ;;  %s332_s1 = inlined_call_operand.vmem [shape: f32[2,4,16,7], index: 1, kind: output, shape index: {}]  }
   0x1   :  { %v45_v0 = vld [vmem:[%s331_s0] sm:$0xff]  ;;  %v47_v1 = vld [vmem:[%s331_s0 + $0x8] sm:$0xff]  ;;  %v49_v2 = vld [vmem:[%s331_s0 + $0x10] sm:$0xff]  ;;  %v66_v12 = vrot.slane %v65_v6, 1  ;;  %v80_v13 = vrot.slane %v79_v8, 1 }
   0x2   :  { %46 = vst [vmem:[#allocation0 + $0x8] sm:$0xff] %v45_v0  ;;  %v51_v4 = vld [vmem:[%s331_s0 + $0x18] sm:$0xff]  ;;  %v53_v5 = vld [vmem:[%s331_s0 + $0x20] sm:$0xff]  ;;  %v55_v7 = vld [vmem:[%s331_s0 + $0x28] sm:$0xff]  ;;  %v73_v10 = vshrl.u32 %v72_v3, 7 }
   0x3   :  { %48 = vst [vmem:[#allocation0 + $0x18] sm:$0xff] %v47_v1  ;;  %v57_v9 = vld [vmem:[%s331_s0 + $0x30] sm:$0xff]  ;;  %v59_v11 = vld [vmem:[%s331_s0 + $0x38] sm:$0xff]  ;;  %v93_v14 = vld [vmem:[#allocation0 + $0x27] ss:$-1 sm:$0xff] }
   0x4   :  { %50 = vst [vmem:[#allocation0 + $0x28] sm:$0xff] %v49_v2  ;;  %vm74_vm0 = vcmp.lt.s32.totalorder %v73_v10, 7  ;;  %v107_v16 = vld [vmem:[#allocation0 + $0x37] ss:$-1 sm:$0xff]  ;;  %v94_v19 = vrot.slane %v93_v14, 1 }
   0x5   :  { %52 = vst [vmem:[#allocation0 + $0x38] sm:$0xff] %v51_v4  ;;  %v121_v22 = vld [vmem:[#allocation0 + $0x47] ss:$-1 sm:$0xff]  ;;  %v108_v24 = vrot.slane %v107_v16, 1  ;;  %v135_v28 = vld [vmem:[#allocation0 + $0x57] ss:$-1 sm:$0xff] }
   0x6   :  { %54 = vst [vmem:[#allocation0 + $0x48] sm:$0xff] %v53_v5  ;;  %v122_v29 = vrot.slane %v121_v22, 1  ;;  %v149_v32 = vld [vmem:[#allocation0 + $0x67] ss:$-1 sm:$0xff]  ;;  %v136_v33 = vrot.slane %v135_v28, 1 }
   0x7   :  { %56 = vst [vmem:[#allocation0 + $0x58] sm:$0xff] %v55_v7  ;;  %v163_v36 = vld [vmem:[#allocation0 + $0x77] ss:$-1 sm:$0xff]  ;;  %v150_v37 = vrot.slane %v149_v32, 1 }
   0x8   :  { %58 = vst [vmem:[#allocation0 + $0x68] sm:$0xff] %v57_v9  ;;  %v164_v40 = vrot.slane %v163_v36, 1 }
   0x9   :  { %60 = vst [vmem:[#allocation0 + $0x78] sm:$0xff] %v59_v11  ;;  %v70_v15 = vld [vmem:[#allocation0 + $0xf] ss:$-1 sm:$0xff] }
   0xa   :  { %67 = vst [vmem:[#allocation1] sm:$0xff] %v66_v12  ;;  %v71_v17 = vrot.slane %v70_v15, 1  ;;  %v84_v18 = vld [vmem:[#allocation0 + $0x1f] ss:$-1 sm:$0xff] }
   0xb   :  { %81 = vst [vmem:[#allocation1 + $0x8] sm:$0xff] %v80_v13  ;;  %v85_v20 = vrot.slane %v84_v18, 1  ;;  %v98_v21 = vld [vmem:[#allocation0 + $0x2f] ss:$-1 sm:$0xff] }
   0xc   :  { %75 = vst.msk [vmem:[#allocation1] sm:$0xff] %vm74_vm0, %v71_v17  ;;  %v99_v23 = vrot.slane %v98_v21, 1  ;;  %v112_v25 = vld [vmem:[#allocation0 + $0x3f] ss:$-1 sm:$0xff] }
   0xd   :  { %89 = vst.msk [vmem:[#allocation1 + $0x8] sm:$0xff] %vm74_vm0, %v85_v20  ;;  %v113_v26 = vrot.slane %v112_v25, 1  ;;  %v126_v27 = vld [vmem:[#allocation0 + $0x4f] ss:$-1 sm:$0xff] }
   0xe   :  { %95 = vst [vmem:[#allocation1 + $0x10] sm:$0xff] %v94_v19  ;;  %v140_v30 = vld [vmem:[#allocation0 + $0x5f] ss:$-1 sm:$0xff]  ;;  %v127_v31 = vrot.slane %v126_v27, 1 }
   0xf   :  { %103 = vst.msk [vmem:[#allocation1 + $0x10] sm:$0xff] %vm74_vm0, %v99_v23  ;;  %v154_v34 = vld [vmem:[#allocation0 + $0x6f] ss:$-1 sm:$0xff]  ;;  %v141_v35 = vrot.slane %v140_v30, 1 }
  0x10   :  { %109 = vst [vmem:[#allocation1 + $0x18] sm:$0xff] %v108_v24  ;;  %v168_v38 = vld [vmem:[#allocation0 + $0x7f] ss:$-1 sm:$0xff]  ;;  %v155_v39 = vrot.slane %v154_v34, 1 }
  0x11   :  { %117 = vst.msk [vmem:[#allocation1 + $0x18] sm:$0xff] %vm74_vm0, %v113_v26  ;;  %v169_v41 = vrot.slane %v168_v38, 1 }
  0x12   :  { %123 = vst [vmem:[#allocation1 + $0x20] sm:$0xff] %v122_v29 }
  0x13   :  { %131 = vst.msk [vmem:[#allocation1 + $0x20] sm:$0xff] %vm74_vm0, %v127_v31  ;;  %v216_v42 = vld [vmem:[#allocation1] sm:$0xff] }
  0x14   :  { %137 = vst [vmem:[#allocation1 + $0x28] sm:$0xff] %v136_v33  ;;  %v218_v43 = vld [vmem:[#allocation1 + $0x8] sm:$0xff] }
  0x15   :  { %145 = vst.msk [vmem:[#allocation1 + $0x28] sm:$0xff] %vm74_vm0, %v141_v35 }
  0x16   :  { %151 = vst [vmem:[#allocation1 + $0x30] sm:$0xff] %v150_v37  ;;  %v220_v44 = vld [vmem:[#allocation1 + $0x10] sm:$0xff] }
  0x17   :  { %159 = vst.msk [vmem:[#allocation1 + $0x30] sm:$0xff] %vm74_vm0, %v155_v39 }
  0x18   :  { %165 = vst [vmem:[#allocation1 + $0x38] sm:$0xff] %v164_v40  ;;  %v222_v45 = vld [vmem:[#allocation1 + $0x18] sm:$0xff] }
  0x19   :  { %173 = vst.msk [vmem:[#allocation1 + $0x38] sm:$0xff] %vm74_vm0, %v169_v41 }
  0x1a   :  { %217 = vst [vmem:[%s332_s1] sm:$0xff] %v216_v42  ;;  %v224_v46 = vld [vmem:[#allocation1 + $0x20] sm:$0xff] }
  0x1b   :  { %219 = vst [vmem:[%s332_s1 + $0x8] sm:$0xff] %v218_v43 }
  0x1c   :  { %221 = vst [vmem:[%s332_s1 + $0x10] sm:$0xff] %v220_v44  ;;  %v226_v47 = vld [vmem:[#allocation1 + $0x28] sm:$0xff] }
  0x1d   :  { %223 = vst [vmem:[%s332_s1 + $0x18] sm:$0xff] %v222_v45 }
  0x1e   :  { %225 = vst [vmem:[%s332_s1 + $0x20] sm:$0xff] %v224_v46  ;;  %v228_v48 = vld [vmem:[#allocation1 + $0x30] sm:$0xff] }
  0x1f   :  { %227 = vst [vmem:[%s332_s1 + $0x28] sm:$0xff] %v226_v47 }
  0x20   :  { %229 = vst [vmem:[%s332_s1 + $0x30] sm:$0xff] %v228_v48  ;;  %v230_v49 = vld [vmem:[#allocation1 + $0x38] sm:$0xff] }
  0x21   :  { %231 = vst [vmem:[%s332_s1 + $0x38] sm:$0xff] %v230_v49 }

// kernel: spectral_conv2d.1
= control target key start
LH: loop header
LB: loop body
LE: loop exit
PB: predicated region body
PF: predicated region fallthrough
CT: control target
= control target key end

     0   :  { %s315_s0 = inlined_call_operand.vmem [shape: f32[2,4,128], index: 0, kind: input, shape index: {}]   ;;  %s316_s1 = inlined_call_operand.vmem [shape: f32[2,4,128], index: 1, kind: input, shape index: {}]   ;;  %s317_s2 = inlined_call_operand.vmem [shape: bf16[4,4,128], index: 2, kind: input, shape index: {}]   ;;  %s318_s3 = inlined_call_operand.vmem [shape: bf16[4,4,128], index: 3, kind: input, shape index: {}]   ;;  %s319_s4 = inlined_call_operand.vmem [shape: f32[2,4,128], index: 4, kind: output, shape index: {0}]   ;;  %s320_s5 = inlined_call_operand.vmem [shape: f32[2,4,128], index: 5, kind: output, shape index: {1}]  }
   0x1   :  { %v23_v0 = vld [vmem:[%s317_s2] sm:$0x3]  ;;  %v149_v6 = vld [vmem:[%s317_s2 + $0x2] sm:$0x3]  ;;  %v151_v15 = vld [vmem:[%s317_s2 + $0x4] sm:$0x3] }
   0x2   :  { %v204_v1 = vunpack.c.l.bf16 %v23_v0  ;;  %v25_v2 = vld [vmem:[%s318_s3] sm:$0x3]  ;;  %v221_v8 = vunpack.c.l.bf16 %v149_v6  ;;  %v150_v9 = vld [vmem:[%s318_s3 + $0x2] sm:$0x3]  ;;  %v241_v18 = vunpack.c.l.bf16 %v151_v15  ;;  %v152_v19 = vld [vmem:[%s318_s3 + $0x4] sm:$0x3] }
   0x3   :  { %v155_v3 = vld [vmem:[%s315_s0] ss:$0 sm:$0xff]  ;;  %v215_v5 = vunpack.c.l.bf16 %v25_v2  ;;  %v157_v10 = vld [vmem:[%s315_s0 + $0x1] ss:$0 sm:$0xff]  ;;  %v234_v14 = vunpack.c.l.bf16 %v150_v9  ;;  %v159_v20 = vld [vmem:[%s315_s0 + $0x2] ss:$0 sm:$0xff]  ;;  %v86_v25 = vunpack.c.l.bf16 %v152_v19 }
   0x4   :  { %v156_v4 = vld [vmem:[%s316_s1] ss:$0 sm:$0xff]  ;;  %v29_v7 = vmul.f32 %v155_v3, %v204_v1  ;;  %v158_v11 = vld [vmem:[%s316_s1 + $0x1] ss:$0 sm:$0xff]  ;;  %v59_v17 = vmul.f32 %v157_v10, %v221_v8  ;;  %v160_v21 = vld [vmem:[%s316_s1 + $0x2] ss:$0 sm:$0xff]  ;;  %v89_v28 = vmul.f32 %v159_v20, %v241_v18 }
   0x5   :  { %v41_v12 = vmul.f32 %v156_v4, %v204_v1  ;;  %v33_v13 = vmul.f32 %v156_v4, %v215_v5  ;;  %v39_v16 = vmul.f32 %v155_v3, %v215_v5  ;;  %v71_v22 = vmul.f32 %v158_v11, %v221_v8  ;;  %v153_v26 = vld [vmem:[%s317_s2 + $0x6] sm:$0x3]  ;;  %v161_v31 = vld [vmem:[%s315_s0 + $0x3] ss:$0 sm:$0xff]  ;;  %v163_v38 = vld [vmem:[%s315_s0 + $0x4] ss:$0 sm:$0xff] }
   0x6   :  { %v63_v24 = vmul.f32 %v158_v11, %v234_v14  ;;  %v113_v29 = vunpack.c.l.bf16 %v153_v26  ;;  %v154_v30 = vld [vmem:[%s318_s3 + $0x6] sm:$0x3]  ;;  %v162_v32 = vld [vmem:[%s316_s1 + $0x3] ss:$0 sm:$0xff]  ;;  %v69_v33 = vmul.f32 %v157_v10, %v234_v14  ;;  %v101_v34 = vmul.f32 %v160_v21, %v241_v18  ;;  %v164_v41 = vld [vmem:[%s316_s1 + $0x4] ss:$0 sm:$0xff] }
   0x7   :  { %v35_v23 = vsub.f32 %v29_v7, %v33_v13  ;;  %v43_v27 = vadd.f32 %v41_v12, %v39_v16  ;;  %v93_v36 = vmul.f32 %v160_v21, %v86_v25  ;;  %v116_v37 = vunpack.c.l.bf16 %v154_v30  ;;  %v165_v48 = vld [vmem:[%s315_s0 + $0x5] ss:$0 sm:$0xff]  ;;  %v167_v51 = vld [vmem:[%s315_s0 + $0x6] ss:$0 sm:$0xff]  ;;  %v169_v60 = vld [vmem:[%s315_s0 + $0x7] ss:$0 sm:$0xff] }
   0x8   :  { %v65_v35 = vsub.f32 %v59_v17, %v63_v24  ;;  %v99_v39 = vmul.f32 %v159_v20, %v86_v25  ;;  %v119_v40 = vmul.f32 %v161_v31, %v113_v29  ;;  %v73_v42 = vadd.f32 %v71_v22, %v69_v33  ;;  %v166_v49 = vld [vmem:[%s316_s1 + $0x5] ss:$0 sm:$0xff]  ;;  %v168_v52 = vld [vmem:[%s316_s1 + $0x6] ss:$0 sm:$0xff]  ;;  %v170_v0 = vld [vmem:[%s316_s1 + $0x7] ss:$0 sm:$0xff] }
   0x9   :  { %v131_v43 = vmul.f32 %v162_v32, %v113_v29  ;;  %v95_v45 = vsub.f32 %v89_v28, %v93_v36  ;;  %v123_v46 = vmul.f32 %v162_v32, %v116_v37  ;;  %v30_v47 = vmul.f32 %v163_v38, %v204_v1 }
   0xa   :  { %v67_v44 = vadd.f32 %v65_v35, %v35_v23  ;;  %v34_v50 = vmul.f32 %v164_v41, %v215_v5  ;;  %v75_v53 = vadd.f32 %v73_v42, %v43_v27  ;;  %v103_v54 = vadd.f32 %v101_v34, %v99_v39 }
   0xb   :  { %v129_v55 = vmul.f32 %v161_v31, %v116_v37  ;;  %v125_v57 = vsub.f32 %v119_v40, %v123_v46  ;;  %v60_v58 = vmul.f32 %v165_v48, %v221_v8  ;;  %v64_v59 = vmul.f32 %v166_v49, %v234_v14 }
   0xc   :  { %v97_v56 = vadd.f32 %v95_v45, %v67_v44  ;;  %v36_v61 = vsub.f32 %v30_v47, %v34_v50  ;;  %v90_v62 = vmul.f32 %v167_v51, %v241_v18  ;;  %v94_v63 = vmul.f32 %v168_v52, %v86_v25 }
   0xd   :  { %v105_v2 = vadd.f32 %v103_v54, %v75_v53  ;;  %v66_v4 = vsub.f32 %v60_v58, %v64_v59  ;;  %v120_v6 = vmul.f32 %v169_v60, %v113_v29  ;;  %v133_v7 = vadd.f32 %v131_v43, %v129_v55 }
   0xe   :  { %v127_v3 = vadd.f32 %v125_v57, %v97_v56  ;;  %v96_v9 = vsub.f32 %v90_v62, %v94_v63  ;;  %v124_v10 = vmul.f32 %v170_v0, %v116_v37  ;;  %v40_v11 = vmul.f32 %v163_v38, %v215_v5 }
   0xf   :  { %v42_v12 = vmul.f32 %v164_v41, %v204_v1  ;;  %v68_v13 = vadd.f32 %v66_v4, %v36_v61  ;;  %v135_v15 = vadd.f32 %v133_v7, %v105_v2  ;;  %v70_v16 = vmul.f32 %v165_v48, %v234_v14 }
  0x10   :  { %137 = vst [vmem:[%s319_s4] sm:$0xf] %v127_v3  ;;  %v72_v17 = vmul.f32 %v166_v49, %v221_v8  ;;  %v126_v19 = vsub.f32 %v120_v6, %v124_v10  ;;  %v100_v21 = vmul.f32 %v167_v51, %v86_v25  ;;  %v102_v22 = vmul.f32 %v168_v52, %v241_v18 }
  0x11   :  { %v44_v20 = vadd.f32 %v42_v12, %v40_v11  ;;  %v98_v23 = vadd.f32 %v96_v9, %v68_v13  ;;  %139 = vst [vmem:[%s320_s5] sm:$0xf] %v135_v15  ;;  %v130_v5 = vmul.f32 %v169_v60, %v116_v37  ;;  %v132_v24 = vmul.f32 %v170_v0, %v113_v29 }
  0x12   :  { %v74_v1 = vadd.f32 %v72_v17, %v70_v16  ;;  %v104_v26 = vadd.f32 %v102_v22, %v100_v21 }
  0x13   :  { %v128_v27 = vadd.f32 %v126_v19, %v98_v23  ;;  %v134_v30 = vadd.f32 %v132_v24, %v130_v5 }
  0x14   :  { %v76_v28 = vadd.f32 %v74_v1, %v44_v20 }
  0x15   :  { %138 = vst [vmem:[%s319_s4 + $0x4] sm:$0xf] %v128_v27 }
  0x16   :  { %v106_v8 = vadd.f32 %v104_v26, %v76_v28 }
  0x18   :  { %v136_v14 = vadd.f32 %v134_v30, %v106_v8 }
  0x1a   :  { %140 = vst [vmem:[%s320_s5 + $0x4] sm:$0xf] %v136_v14 }

</bundles_post_ra>
